<compile_context>
chip_gen: v6e
topology: v6e:2x2x1
jax: 0.10.0
libtpu: 0.0.40
codegen_flags: <defaults>
</compile_context>

<pallas_src>
import math
import numpy as np
import jax
import jax.numpy as jnp
from jax.experimental import pallas as pl
from jax.experimental.pallas import tpu as pltpu

# ---------------- configuration (small, consistent with the module) ----------------
NODE_NUM     = 4          # graph nodes (batch for the per-source models)
INPUT_DIMS   = 4          # low_level_dim
CHUNK_LEN    = 8          # chunk_length (seq_len for SelfAttention)
TRACE_HIDDEN = [8, 16]    # trace_hiddens
KERNEL_SIZES = [3, 3]     # trace_kernel_sizes
DILATION     = 3          # ConvNet dilation base (dilation_size = 3**i)
FUSE_DIM     = 16         # fuse_dim (even)
BN_EPS       = 1e-5
NUM_SRC      = 5          # latency, cpu, memory, networkout, networkin

K1, K2 = KERNEL_SIZES
C1, C2 = TRACE_HIDDEN
D1, D2 = DILATION ** 0, DILATION ** 1      # per-layer dilation

CIN_ALL = NUM_SRC * INPUT_DIMS             # 20 : stacked input channels
H1_ALL  = NUM_SRC * C1                     # 40 : stacked layer-1 channels
H2_ALL  = NUM_SRC * C2                     # 80 : stacked layer-2 channels
HALF    = FUSE_DIM // 2                    # 8  : GLU output width
LANES   = 128                              # slab lane width


def _ceil8(n):
    return (n + 7) // 8 * 8


# ---- packed parameter slab layout (rows of a [TOTAL_ROWS, 128] f32 array) ----------
ROW_W1     = 0                                   # [K1*20, 40] im2col block-diag, layer 1
ROW_W2     = ROW_W1 + _ceil8(K1 * CIN_ALL)       # 64  : [K2*40, 80] im2col block-diag, layer 2
ROW_VEC    = ROW_W2 + _ceil8(K2 * H1_ALL)        # 184 : g1, be1, g2, be2, fuse_b halves (6 rows)
ROW_AW     = ROW_VEC + 8                         # 192 : stacked atten_w  [T, 80]
ROW_AB     = ROW_AW + _ceil8(CHUNK_LEN)          # 200 : stacked atten_bias [T, 5]
ROW_BSUM   = ROW_AB + _ceil8(CHUNK_LEN)          # 208 : channel->source sum indicator [80, 5]
ROW_BEXP   = ROW_BSUM + _ceil8(H2_ALL)           # 288 : source->channel expand indicator [5, 80]
ROW_FWV    = ROW_BEXP + _ceil8(NUM_SRC)          # 296 : fuse weight value half [80, 8]
ROW_FWG    = ROW_FWV + _ceil8(H2_ALL)            # 376 : fuse weight gate  half [80, 8]
TOTAL_ROWS = ROW_FWG + _ceil8(H2_ALL)            # 456 rows x 128 lanes x 4 B ~= 228 KiB


# ---------------------------------- fused kernel ------------------------------------
def fused_forward_kernel(x_ref, p_ref, out_ref):
    """Whole MultiSourceEncoder forward (minus GraphModel) in one kernel.

    x_ref   : [N, T, 5*Cin]   five sources stacked on the channel (lane) axis
    p_ref   : [456, 128]      packed parameter slab (layout per ROW_* constants)
    out_ref : [N, FUSE_DIM//2]
    """
    N, T, _ = x_ref.shape
    NT = N * T

    # ---- static views into the packed parameter slab (free: no tile-crossing) ----
    w1 = p_ref[ROW_W1:ROW_W1 + K1 * CIN_ALL, :H1_ALL]          # [60, 40]
    w2 = p_ref[ROW_W2:ROW_W2 + K2 * H1_ALL, :H2_ALL]           # [120, 80]
    vec = p_ref[ROW_VEC:ROW_VEC + 8, :]                        # one aligned (8,128) tile
    g1, be1 = vec[0:1, :H1_ALL], vec[1:2, :H1_ALL]
    g2, be2 = vec[2:3, :H2_ALL], vec[3:4, :H2_ALL]
    fb_val, fb_gate = vec[4:5, :HALF], vec[5:6, :HALF]
    aw   = p_ref[ROW_AW:ROW_AW + T, :H2_ALL]                   # [T, 80]
    ab   = p_ref[ROW_AB:ROW_AB + T, :NUM_SRC]                  # [T, 5]
    bsum = p_ref[ROW_BSUM:ROW_BSUM + H2_ALL, :NUM_SRC]         # [80, 5]
    bexp = p_ref[ROW_BEXP:ROW_BEXP + NUM_SRC, :H2_ALL]         # [5, 80]
    fw_val  = p_ref[ROW_FWV:ROW_FWV + H2_ALL, :HALF]           # [80, 8]
    fw_gate = p_ref[ROW_FWG:ROW_FWG + H2_ALL, :HALF]           # [80, 8]

    def im2col(h3, k, dil, c):
        # columns ordered tap-major: block j multiplies W rows j*c:(j+1)*c and carries
        # the causal shift (k-1-j)*dil, matching PyTorch Conv1d + Chomp1d.
        cols = []
        for j in range(k):
            s = (k - 1 - j) * dil
            if s == 0:
                cols.append(h3)
            else:
                cols.append(jnp.concatenate(
                    [jnp.zeros((N, s, c), jnp.float32), h3[:, :T - s, :]], axis=1))
        return jnp.concatenate(cols, axis=-1).reshape(NT, k * c)

    def bn_relu(h, g, be):
        # Train-mode BatchNorm1d (biased variance) per channel over the N*T rows.
        # E[x]/E[x^2] are two independent cross-sublane reductions; the affine is
        # folded into a single FMA.  (Conv bias omitted: train-mode BN cancels any
        # per-channel constant exactly, so it cannot change the output.)
        inv = 1.0 / h.shape[0]
        m1 = jnp.sum(h, axis=0, keepdims=True) * inv
        m2 = jnp.sum(h * h, axis=0, keepdims=True) * inv
        var = jnp.maximum(m2 - m1 * m1, 0.0)                    # guard fp cancellation
        scale = g * jax.lax.rsqrt(var + BN_EPS)
        shift = be - m1 * scale
        return jnp.maximum(h * scale + shift, 0.0)

    x = x_ref[...].astype(jnp.float32)                          # [N, T, 20]

    # --- ConvNet: 2 dilated causal conv + BN + ReLU layers, 5 sources block-diagonal,
    #     one im2col dot per layer ---
    h1 = bn_relu(jnp.dot(im2col(x, K1, D1, CIN_ALL), w1,
                         preferred_element_type=jnp.float32), g1, be1)      # [NT, 40]
    h2 = bn_relu(jnp.dot(im2col(h1.reshape(N, T, H1_ALL), K2, D2, H1_ALL), w2,
                         preferred_element_type=jnp.float32), g2, be2)      # [NT, 80]

    # --- per-source SelfAttention pooling (all 5 sources at once) ---
    h3 = h2.reshape(N, T, H2_ALL)
    p  = (h3 * aw[None, :, :]).reshape(NT, H2_ALL)
    scores = jnp.dot(p, bsum, preferred_element_type=jnp.float32)           # [NT, 5]
    attn = jnp.tanh(scores.reshape(N, T, NUM_SRC) + ab[None, :, :])         # [N, T, 5]
    attn_f = jnp.dot(attn.reshape(NT, NUM_SRC), bexp,
                     preferred_element_type=jnp.float32)                    # [NT, 80]
    pooled = jnp.sum((attn_f * h2).reshape(N, T, H2_ALL), axis=1)           # [N, 80]

    # --- fuse Linear + GLU (pre-split halves: value, gate) ---
    val  = jnp.dot(pooled, fw_val,  preferred_element_type=jnp.float32) + fb_val
    gate = jnp.dot(pooled, fw_gate, preferred_element_type=jnp.float32) + fb_gate
    out_ref[...] = (val * jax.nn.sigmoid(gate)).astype(out_ref.dtype)       # [N, 8]


# ------------------------------ pallas_call wrapper ---------------------------------
def _vmem():
    return pl.BlockSpec(memory_space=pltpu.MemorySpace.VMEM)


@jax.jit
def multi_source_encoder(x_all, param_slab):
    """x_all: [N, T, 5*Cin] already stacked by the producer.  param_slab: [456, 128]."""
    n = x_all.shape[0]
    fused = pl.pallas_call(
        fused_forward_kernel,
        out_shape=jax.ShapeDtypeStruct((n, HALF), jnp.float32),
        in_specs=[_vmem(), _vmem()],
        out_specs=_vmem(),
    )(x_all, param_slab)
    # TODO(synk): GraphModel (DGL GATv2Conv + GlobalAttentionPooling) requires an external
    # graph structure and has no clean Pallas equivalent; return the fused GLU feature.
    return fused


# ------------------------------ parameter construction ------------------------------
def init_source_params(key):
    ks = jax.random.split(key, 5)
    lim1 = 1.0 / math.sqrt(INPUT_DIMS * K1)
    lim2 = 1.0 / math.sqrt(C1 * K2)
    stdv = math.sqrt(6.0 / (C2 + 1))   # glorot for atten_w (T, C2, 1)
    return {
        # conv weights stored as [K, Cin, Cout] (transpose of PyTorch's [Cout, Cin, K])
        "w1": jax.random.uniform(ks[0], (K1, INPUT_DIMS, C1), jnp.float32, -lim1, lim1),
        "b1": jax.random.uniform(ks[1], (1, C1), jnp.float32, -lim1, lim1),
        "g1": jnp.ones((1, C1), jnp.float32),
        "be1": jnp.zeros((1, C1), jnp.float32),
        "w2": jax.random.uniform(ks[2], (K2, C1, C2), jnp.float32, -lim2, lim2),
        "b2": jax.random.uniform(ks[3], (1, C2), jnp.float32, -lim2, lim2),
        "g2": jnp.ones((1, C2), jnp.float32),
        "be2": jnp.zeros((1, C2), jnp.float32),
        "aw": jax.random.uniform(ks[4], (CHUNK_LEN, C2), jnp.float32, -stdv, stdv),
        "ab": jnp.zeros((1, CHUNK_LEN), jnp.float32),   # atten_bias filled with 0
    }


def init_params(key):
    klat, kcpu, kmem, kout, kin, kfuse = jax.random.split(key, 6)
    fuse_in = NUM_SRC * C2
    lim = 1.0 / math.sqrt(fuse_in)
    return {
        "latency": init_source_params(klat),
        "cpu": init_source_params(kcpu),
        "memory": init_source_params(kmem),   # created (as in __init__) but unused in forward
        "networkout": init_source_params(kout),
        "networkin": init_source_params(kin),
        "fuse_w": jax.random.uniform(kfuse, (fuse_in, FUSE_DIM), jnp.float32, -lim, lim),
        "fuse_b": jnp.zeros((1, FUSE_DIM), jnp.float32),
    }


def pack_params(params):
    """Pack every parameter into ONE lane-aligned f32 slab (done once, host-side)."""
    # Reference forward encodes the memory signal with networkout_model (bug preserved):
    used = [params["latency"], params["cpu"], params["networkout"],
            params["networkout"], params["networkin"]]

    def block_diag(mats):
        cin, cout = mats[0].shape
        w = np.zeros((NUM_SRC * cin, NUM_SRC * cout), np.float32)
        for s, m in enumerate(mats):
            w[s * cin:(s + 1) * cin, s * cout:(s + 1) * cout] = np.asarray(m)
        return w

    slab = np.zeros((TOTAL_ROWS, LANES), np.float32)

    # im2col conv weights: rows j*Cin:(j+1)*Cin hold tap j (shift (K-1-j)*dil)
    for j in range(K1):
        slab[ROW_W1 + j * CIN_ALL: ROW_W1 + (j + 1) * CIN_ALL, :H1_ALL] = \
            block_diag([np.asarray(p["w1"][j]) for p in used])
    for j in range(K2):
        slab[ROW_W2 + j * H1_ALL: ROW_W2 + (j + 1) * H1_ALL, :H2_ALL] = \
            block_diag([np.asarray(p["w2"][j]) for p in used])

    def cat(key):
        return np.concatenate([np.asarray(p[key])[0] for p in used])

    # BN affine vectors + fuse bias halves (conv biases b1/b2 are omitted:
    # train-mode BN cancels per-channel constants exactly).
    slab[ROW_VEC + 0, :H1_ALL] = cat("g1")
    slab[ROW_VEC + 1, :H1_ALL] = cat("be1")
    slab[ROW_VEC + 2, :H2_ALL] = cat("g2")
    slab[ROW_VEC + 3, :H2_ALL] = cat("be2")
    fb = np.asarray(params["fuse_b"])[0]
    slab[ROW_VEC + 4, :HALF] = fb[:HALF]
    slab[ROW_VEC + 5, :HALF] = fb[HALF:]

    # stacked SelfAttention parameters
    slab[ROW_AW:ROW_AW + CHUNK_LEN, :H2_ALL] = np.concatenate(
        [np.asarray(p["aw"]) for p in used], axis=-1)
    slab[ROW_AB:ROW_AB + CHUNK_LEN, :NUM_SRC] = np.stack(
        [np.asarray(p["ab"])[0] for p in used], axis=-1)

    # channel<->source indicator constants (replace in-kernel iota construction)
    ch = np.arange(H2_ALL) // C2
    slab[ROW_BSUM:ROW_BSUM + H2_ALL, :NUM_SRC] = \
        (ch[:, None] == np.arange(NUM_SRC)[None, :]).astype(np.float32)
    slab[ROW_BEXP:ROW_BEXP + NUM_SRC, :H2_ALL] = \
        (np.arange(NUM_SRC)[:, None] == ch[None, :]).astype(np.float32)

    # pre-split fuse weight halves (value, gate) stacked on rows (no lane-offset slice)
    fw = np.asarray(params["fuse_w"])
    slab[ROW_FWV:ROW_FWV + H2_ALL, :HALF] = fw[:, :HALF]
    slab[ROW_FWG:ROW_FWG + H2_ALL, :HALF] = fw[:, HALF:]

    return jnp.asarray(slab)


# ------------------------- pure-JAX reference (correctness) -------------------------
def _reference_source(x, p):
    def conv_bn_relu(h, w, b, g, be, k, dil):
        n, t, _ = h.shape
        out = jnp.zeros((n, t, w.shape[-1]), jnp.float32)
        for j in range(k):
            s = (k - 1 - j) * dil
            shifted = jnp.pad(h, ((0, 0), (s, 0), (0, 0)))[:, :t, :]
            out = out + jnp.einsum("ntc,cd->ntd", shifted, w[j])
        out = out + b                                     # conv bias (cancelled by BN)
        flat = out.reshape(-1, out.shape[-1])
        m, v = flat.mean(0), flat.var(0)                  # train-mode biased stats
        out = (out - m) * jax.lax.rsqrt(v + BN_EPS) * g + be
        return jnp.maximum(out, 0.0)

    h = conv_bn_relu(x, p["w1"], p["b1"], p["g1"], p["be1"], K1, D1)
    h = conv_bn_relu(h, p["w2"], p["b2"], p["g2"], p["be2"], K2, D2)
    scores = jnp.einsum("ntc,tc->nt", h, p["aw"]) + p["ab"][0][None, :]
    attnw = jnp.tanh(scores)
    return jnp.einsum("nt,ntc->nc", attnw, h)


def reference_forward(inputs, params):
    names = ["latency", "cpu", "memory", "networkout", "networkin"]
    used = [params["latency"], params["cpu"], params["networkout"],
            params["networkout"], params["networkin"]]       # memory bug preserved
    embs = [_reference_source(inputs[n], p) for n, p in zip(names, used)]
    feat = jnp.concatenate(embs, axis=-1)
    z = feat @ params["fuse_w"] + params["fuse_b"]
    return z[:, :HALF] * jax.nn.sigmoid(z[:, HALF:])


# -------------------------------------- main ----------------------------------------
if __name__ == "__main__":
    key = jax.random.PRNGKey(0)
    kp, kx = jax.random.split(key)
    params = init_params(kp)
    slab = pack_params(params)     # one-time host-side packing (outside the hot path)

    names = ["latency", "cpu", "memory", "networkout", "networkin"]
    sig_keys = jax.random.split(kx, NUM_SRC)
    inputs = {
        name: jax.random.normal(k, (NODE_NUM, CHUNK_LEN, INPUT_DIMS), jnp.float32)
        for name, k in zip(names, sig_keys)
    }

    # Producer-side stacking, done ONCE outside the jitted hot path (per perf review
    # the in-wrapper concat launch was removed).
    x_all = jnp.concatenate([inputs[n] for n in names], axis=-1)   # [N, T, 5*Cin]

    out = jax.block_until_ready(multi_source_encoder(x_all, slab))
    assert out.shape == (NODE_NUM, HALF), out.shape
    assert bool(jnp.all(jnp.isfinite(out)))

    ref = reference_forward(inputs, params)
    max_err = float(jnp.max(jnp.abs(out - ref)))
    assert max_err < 5e-2, f"kernel vs reference max abs err {max_err}"
    print("KERNEL_OK")
</pallas_src>

<mosaic_0001>
module attributes {stable_mosaic.version = 11 : i64} {
  func.func @fused_forward_kernel(%arg0: memref<4x8x20xf32, #tpu.memory_space<vmem>>, %arg1: memref<456x128xf32, #tpu.memory_space<vmem>>, %arg2: memref<4x8xf32, #tpu.memory_space<vmem>>) attributes {dimension_semantics = [], scalar_prefetch = 0 : i64, scratch_operands = 0 : i64, tpu.core_type = #tpu.core_type<tc>} {
    %c0 = arith.constant 0 : index
    %c0_0 = arith.constant 0 : index
    %0 = vector.load %arg1[%c0, %c0_0] : memref<456x128xf32, #tpu.memory_space<vmem>>, vector<60x40xf32>
    %c64 = arith.constant 64 : index
    %c0_1 = arith.constant 0 : index
    %1 = vector.load %arg1[%c64, %c0_1] : memref<456x128xf32, #tpu.memory_space<vmem>>, vector<120x80xf32>
    %c184 = arith.constant 184 : index
    %c0_2 = arith.constant 0 : index
    %2 = vector.load %arg1[%c184, %c0_2] : memref<456x128xf32, #tpu.memory_space<vmem>>, vector<8x128xf32>
    %3 = vector.extract_strided_slice %2 {offsets = [0, 0], sizes = [1, 40], strides = [1, 1]} : vector<8x128xf32> to vector<1x40xf32>
    %4 = vector.extract_strided_slice %2 {offsets = [1, 0], sizes = [1, 40], strides = [1, 1]} : vector<8x128xf32> to vector<1x40xf32>
    %5 = vector.extract_strided_slice %2 {offsets = [2, 0], sizes = [1, 80], strides = [1, 1]} : vector<8x128xf32> to vector<1x80xf32>
    %6 = vector.extract_strided_slice %2 {offsets = [3, 0], sizes = [1, 80], strides = [1, 1]} : vector<8x128xf32> to vector<1x80xf32>
    %7 = vector.extract_strided_slice %2 {offsets = [4, 0], sizes = [1, 8], strides = [1, 1]} : vector<8x128xf32> to vector<1x8xf32>
    %8 = vector.extract_strided_slice %2 {offsets = [5, 0], sizes = [1, 8], strides = [1, 1]} : vector<8x128xf32> to vector<1x8xf32>
    %c192 = arith.constant 192 : index
    %c0_3 = arith.constant 0 : index
    %9 = vector.load %arg1[%c192, %c0_3] : memref<456x128xf32, #tpu.memory_space<vmem>>, vector<8x80xf32>
    %c200 = arith.constant 200 : index
    %c0_4 = arith.constant 0 : index
    %10 = vector.load %arg1[%c200, %c0_4] : memref<456x128xf32, #tpu.memory_space<vmem>>, vector<8x5xf32>
    %c208 = arith.constant 208 : index
    %c0_5 = arith.constant 0 : index
    %11 = vector.load %arg1[%c208, %c0_5] : memref<456x128xf32, #tpu.memory_space<vmem>>, vector<80x5xf32>
    %c288 = arith.constant 288 : index
    %c0_6 = arith.constant 0 : index
    %12 = vector.load %arg1[%c288, %c0_6] : memref<456x128xf32, #tpu.memory_space<vmem>>, vector<5x80xf32>
    %c296 = arith.constant 296 : index
    %c0_7 = arith.constant 0 : index
    %13 = vector.load %arg1[%c296, %c0_7] : memref<456x128xf32, #tpu.memory_space<vmem>>, vector<80x8xf32>
    %c376 = arith.constant 376 : index
    %c0_8 = arith.constant 0 : index
    %14 = vector.load %arg1[%c376, %c0_8] : memref<456x128xf32, #tpu.memory_space<vmem>>, vector<80x8xf32>
    %c0_9 = arith.constant 0 : index
    %c0_10 = arith.constant 0 : index
    %c0_11 = arith.constant 0 : index
    %15 = vector.load %arg0[%c0_9, %c0_10, %c0_11] : memref<4x8x20xf32, #tpu.memory_space<vmem>>, vector<4x8x20xf32>
    %cst = arith.constant 0.000000e+00 : f32
    %16 = vector.broadcast %cst : f32 to vector<4x2x20xf32>
    %17 = vector.extract_strided_slice %15 {offsets = [0, 0, 0], sizes = [4, 6, 20], strides = [1, 1, 1]} : vector<4x8x20xf32> to vector<4x6x20xf32>
    %18 = tpu.concatenate %16, %17 in 1 : vector<4x2x20xf32>, vector<4x6x20xf32> -> vector<4x8x20xf32>
    %cst_12 = arith.constant 0.000000e+00 : f32
    %19 = vector.broadcast %cst_12 : f32 to vector<4x1x20xf32>
    %20 = vector.extract_strided_slice %15 {offsets = [0, 0, 0], sizes = [4, 7, 20], strides = [1, 1, 1]} : vector<4x8x20xf32> to vector<4x7x20xf32>
    %21 = tpu.concatenate %19, %20 in 1 : vector<4x1x20xf32>, vector<4x7x20xf32> -> vector<4x8x20xf32>
    %22 = tpu.concatenate %18, %21, %15 in 2 : vector<4x8x20xf32>, vector<4x8x20xf32>, vector<4x8x20xf32> -> vector<4x8x60xf32>
    %23 = vector.shape_cast %22 : vector<4x8x60xf32> to vector<32x60xf32>
    %cst_13 = arith.constant dense<0.000000e+00> : vector<32x40xf32>
    %24 = tpu.matmul %23, %0, %cst_13 {dimension_numbers = #tpu.dot_dimension_numbers<[1], [0], [0], [1], [0, 0, 1, 1], [], []>} : vector<32x60xf32>, vector<60x40xf32>, vector<32x40xf32> -> vector<32x40xf32>
    %cst_14 = arith.constant dense<0.000000e+00> : vector<40xf32>
    %25 = vector.multi_reduction <add>, %24, %cst_14 [0] : vector<32x40xf32> to vector<40xf32>
    %26 = vector.shape_cast %25 : vector<40xf32> to vector<1x40xf32>
    %cst_15 = arith.constant 3.125000e-02 : f32
    %27 = vector.broadcast %cst_15 : f32 to vector<1x40xf32>
    %28 = arith.mulf %26, %27 : vector<1x40xf32>
    %29 = arith.mulf %24, %24 : vector<32x40xf32>
    %cst_16 = arith.constant dense<0.000000e+00> : vector<40xf32>
    %30 = vector.multi_reduction <add>, %29, %cst_16 [0] : vector<32x40xf32> to vector<40xf32>
    %31 = vector.shape_cast %30 : vector<40xf32> to vector<1x40xf32>
    %cst_17 = arith.constant 3.125000e-02 : f32
    %32 = vector.broadcast %cst_17 : f32 to vector<1x40xf32>
    %33 = arith.mulf %31, %32 : vector<1x40xf32>
    %34 = arith.mulf %28, %28 : vector<1x40xf32>
    %35 = arith.subf %33, %34 : vector<1x40xf32>
    %cst_18 = arith.constant 0.000000e+00 : f32
    %36 = vector.broadcast %cst_18 : f32 to vector<1x40xf32>
    %37 = arith.maximumf %35, %36 : vector<1x40xf32>
    %cst_19 = arith.constant 9.99999974E-6 : f32
    %38 = vector.broadcast %cst_19 : f32 to vector<1x40xf32>
    %39 = arith.addf %37, %38 : vector<1x40xf32>
    %40 = math.rsqrt %39 : vector<1x40xf32>
    %41 = arith.mulf %3, %40 : vector<1x40xf32>
    %42 = arith.mulf %28, %41 : vector<1x40xf32>
    %43 = arith.subf %4, %42 : vector<1x40xf32>
    %44 = vector.broadcast %41 : vector<1x40xf32> to vector<32x40xf32>
    %45 = arith.mulf %24, %44 : vector<32x40xf32>
    %46 = vector.broadcast %43 : vector<1x40xf32> to vector<32x40xf32>
    %47 = arith.addf %45, %46 : vector<32x40xf32>
    %cst_20 = arith.constant 0.000000e+00 : f32
    %48 = vector.broadcast %cst_20 : f32 to vector<32x40xf32>
    %49 = arith.maximumf %47, %48 : vector<32x40xf32>
    %50 = vector.shape_cast %49 : vector<32x40xf32> to vector<4x8x40xf32>
    %cst_21 = arith.constant 0.000000e+00 : f32
    %51 = vector.broadcast %cst_21 : f32 to vector<4x6x40xf32>
    %52 = vector.extract_strided_slice %50 {offsets = [0, 0, 0], sizes = [4, 2, 40], strides = [1, 1, 1]} : vector<4x8x40xf32> to vector<4x2x40xf32>
    %53 = tpu.concatenate %51, %52 in 1 : vector<4x6x40xf32>, vector<4x2x40xf32> -> vector<4x8x40xf32>
    %cst_22 = arith.constant 0.000000e+00 : f32
    %54 = vector.broadcast %cst_22 : f32 to vector<4x3x40xf32>
    %55 = vector.extract_strided_slice %50 {offsets = [0, 0, 0], sizes = [4, 5, 40], strides = [1, 1, 1]} : vector<4x8x40xf32> to vector<4x5x40xf32>
    %56 = tpu.concatenate %54, %55 in 1 : vector<4x3x40xf32>, vector<4x5x40xf32> -> vector<4x8x40xf32>
    %57 = tpu.concatenate %53, %56, %50 in 2 : vector<4x8x40xf32>, vector<4x8x40xf32>, vector<4x8x40xf32> -> vector<4x8x120xf32>
    %58 = vector.shape_cast %57 : vector<4x8x120xf32> to vector<32x120xf32>
    %cst_23 = arith.constant dense<0.000000e+00> : vector<32x80xf32>
    %59 = tpu.matmul %58, %1, %cst_23 {dimension_numbers = #tpu.dot_dimension_numbers<[1], [0], [0], [1], [0, 0, 1, 1], [], []>} : vector<32x120xf32>, vector<120x80xf32>, vector<32x80xf32> -> vector<32x80xf32>
    %cst_24 = arith.constant dense<0.000000e+00> : vector<80xf32>
    %60 = vector.multi_reduction <add>, %59, %cst_24 [0] : vector<32x80xf32> to vector<80xf32>
    %61 = vector.shape_cast %60 : vector<80xf32> to vector<1x80xf32>
    %cst_25 = arith.constant 3.125000e-02 : f32
    %62 = vector.broadcast %cst_25 : f32 to vector<1x80xf32>
    %63 = arith.mulf %61, %62 : vector<1x80xf32>
    %64 = arith.mulf %59, %59 : vector<32x80xf32>
    %cst_26 = arith.constant dense<0.000000e+00> : vector<80xf32>
    %65 = vector.multi_reduction <add>, %64, %cst_26 [0] : vector<32x80xf32> to vector<80xf32>
    %66 = vector.shape_cast %65 : vector<80xf32> to vector<1x80xf32>
    %cst_27 = arith.constant 3.125000e-02 : f32
    %67 = vector.broadcast %cst_27 : f32 to vector<1x80xf32>
    %68 = arith.mulf %66, %67 : vector<1x80xf32>
    %69 = arith.mulf %63, %63 : vector<1x80xf32>
    %70 = arith.subf %68, %69 : vector<1x80xf32>
    %cst_28 = arith.constant 0.000000e+00 : f32
    %71 = vector.broadcast %cst_28 : f32 to vector<1x80xf32>
    %72 = arith.maximumf %70, %71 : vector<1x80xf32>
    %cst_29 = arith.constant 9.99999974E-6 : f32
    %73 = vector.broadcast %cst_29 : f32 to vector<1x80xf32>
    %74 = arith.addf %72, %73 : vector<1x80xf32>
    %75 = math.rsqrt %74 : vector<1x80xf32>
    %76 = arith.mulf %5, %75 : vector<1x80xf32>
    %77 = arith.mulf %63, %76 : vector<1x80xf32>
    %78 = arith.subf %6, %77 : vector<1x80xf32>
    %79 = vector.broadcast %76 : vector<1x80xf32> to vector<32x80xf32>
    %80 = arith.mulf %59, %79 : vector<32x80xf32>
    %81 = vector.broadcast %78 : vector<1x80xf32> to vector<32x80xf32>
    %82 = arith.addf %80, %81 : vector<32x80xf32>
    %cst_30 = arith.constant 0.000000e+00 : f32
    %83 = vector.broadcast %cst_30 : f32 to vector<32x80xf32>
    %84 = arith.maximumf %82, %83 : vector<32x80xf32>
    %85 = vector.shape_cast %84 : vector<32x80xf32> to vector<4x8x80xf32>
    %86 = vector.shape_cast %9 : vector<8x80xf32> to vector<1x8x80xf32>
    %87 = vector.broadcast %86 : vector<1x8x80xf32> to vector<4x8x80xf32>
    %88 = arith.mulf %85, %87 : vector<4x8x80xf32>
    %89 = vector.shape_cast %88 : vector<4x8x80xf32> to vector<32x80xf32>
    %cst_31 = arith.constant dense<0.000000e+00> : vector<32x5xf32>
    %90 = tpu.matmul %89, %11, %cst_31 {dimension_numbers = #tpu.dot_dimension_numbers<[1], [0], [0], [1], [0, 0, 1, 1], [], []>} : vector<32x80xf32>, vector<80x5xf32>, vector<32x5xf32> -> vector<32x5xf32>
    %91 = vector.shape_cast %90 : vector<32x5xf32> to vector<4x8x5xf32>
    %92 = vector.shape_cast %10 : vector<8x5xf32> to vector<1x8x5xf32>
    %93 = vector.broadcast %92 : vector<1x8x5xf32> to vector<4x8x5xf32>
    %94 = arith.addf %91, %93 : vector<4x8x5xf32>
    %95 = math.tanh %94 : vector<4x8x5xf32>
    %96 = vector.shape_cast %95 : vector<4x8x5xf32> to vector<32x5xf32>
    %cst_32 = arith.constant dense<0.000000e+00> : vector<32x80xf32>
    %97 = tpu.matmul %96, %12, %cst_32 {dimension_numbers = #tpu.dot_dimension_numbers<[1], [0], [0], [1], [0, 0, 1, 1], [], []>} : vector<32x5xf32>, vector<5x80xf32>, vector<32x80xf32> -> vector<32x80xf32>
    %98 = arith.mulf %97, %84 : vector<32x80xf32>
    %99 = vector.shape_cast %98 : vector<32x80xf32> to vector<4x8x80xf32>
    %cst_33 = arith.constant dense<0.000000e+00> : vector<4x80xf32>
    %100 = vector.multi_reduction <add>, %99, %cst_33 [1] : vector<4x8x80xf32> to vector<4x80xf32>
    %cst_34 = arith.constant dense<0.000000e+00> : vector<4x8xf32>
    %101 = tpu.matmul %100, %13, %cst_34 {dimension_numbers = #tpu.dot_dimension_numbers<[1], [0], [0], [1], [0, 0, 1, 1], [], []>} : vector<4x80xf32>, vector<80x8xf32>, vector<4x8xf32> -> vector<4x8xf32>
    %102 = vector.broadcast %7 : vector<1x8xf32> to vector<4x8xf32>
    %103 = arith.addf %101, %102 : vector<4x8xf32>
    %cst_35 = arith.constant dense<0.000000e+00> : vector<4x8xf32>
    %104 = tpu.matmul %100, %14, %cst_35 {dimension_numbers = #tpu.dot_dimension_numbers<[1], [0], [0], [1], [0, 0, 1, 1], [], []>} : vector<4x80xf32>, vector<80x8xf32>, vector<4x8xf32> -> vector<4x8xf32>
    %105 = vector.broadcast %8 : vector<1x8xf32> to vector<4x8xf32>
    %106 = arith.addf %104, %105 : vector<4x8xf32>
    %107 = arith.negf %106 : vector<4x8xf32>
    %108 = math.exp %107 : vector<4x8xf32>
    %cst_36 = arith.constant 1.000000e+00 : f32
    %109 = vector.broadcast %cst_36 : f32 to vector<4x8xf32>
    %110 = arith.addf %109, %108 : vector<4x8xf32>
    %111 = arith.divf %109, %110 : vector<4x8xf32>
    %112 = arith.mulf %103, %111 : vector<4x8xf32>
    %c0_37 = arith.constant 0 : index
    %c0_38 = arith.constant 0 : index
    %113 = vector.load %arg2[%c0_37, %c0_38] : memref<4x8xf32, #tpu.memory_space<vmem>>, vector<4x8xf32>
    tpu.vector_store %arg2[%c0_37, %c0_38], %112 {strides = array<i32>} : memref<4x8xf32, #tpu.memory_space<vmem>>, vector<4x8xf32>,
    return
  }
}

</mosaic_0001>

<bundles_post_ra>
// kernel: multi_source_encoder.1
= control target key start
LH: loop header
LB: loop body
LE: loop exit
PB: predicated region body
PF: predicated region fallthrough
CT: control target
= control target key end

     0   :  { %7 = vsyncpa [#allocation3], 0  ;;  %s1500_s0 = inlined_call_operand.hbm [shape: f32[4,8,20], index: 0, kind: input, shape index: {}]   ;;  %s1501_s1 = inlined_call_operand.hbm [shape: f32[456,128], index: 1, kind: input, shape index: {}]   ;;  %s1502_s2 = inlined_call_operand.hbm [shape: f32[4,8], index: 2, kind: output, shape index: {}]  }
   0x1   :  { %8 = vsyncpa [#allocation6], 0 }
   0x2   :  { %9 = vsyncpa [#allocation4], 0  ;;  %s1313_s9 = smov [#allocation2]  }
   0x3   :  { %s15_s10 = sshll.u32 %s1313_s9, 4  ;;  %s16_s10 = int_to_ptr.vmem [resolvable:$true] %s15_s10 }
   0x4   :  { %s1255_s11 = scalar_lea.vmem %s16_s10, 512  ;;  %p1260_p1 = scmp.lt.s32.totalorder %s16_s10, %s16_s10 }
   0x5   :  { %p1256_p0 = scmp.ne.s32.totalorder %s16_s10, %s1255_s11  ;;  %p1261_p2 = scmp.lt.s32.totalorder %s1255_s11, %s1255_s11 }
   0x7   :  { %p1262_p3 = por %p1261_p2, %p1260_p1 }
   0x9   :  { %p1263_p4 = pnand %p1262_p3, %p1256_p0 }
   0xb   :  { %1266 = shalt.err (!%p1263_p4)
}
   0xc   :  { %s1314_s12 = smov 128   ;;  %s1315_s13 = smov 8  }
   0xd   :  { %21 = dma.hbm_to_vmem [thread:$0]  %s1500_s0, 512, %s16_s10, [#allocation3], %s1314_s12, %s1314_s12, %s1315_s13  }
   0xe   :  { %s1316_s16 = smov [#allocation5]  }
   0xf   :  { %s27_s17 = sshll.u32 %s1316_s16, 4  ;;  %s28_s17 = int_to_ptr.vmem [resolvable:$true] %s27_s17 }
  0x10   :  { %s1275_s18 = scalar_lea.vmem %s28_s17, 7296  ;;  %p1280_p6 = scmp.lt.s32.totalorder %s28_s17, %s28_s17 }
  0x11   :  { %p1276_p5 = scmp.ne.s32.totalorder %s28_s17, %s1275_s18  ;;  %p1281_p7 = scmp.lt.s32.totalorder %s1275_s18, %s1275_s18 }
  0x13   :  { %p1282_p8 = por %p1281_p7, %p1280_p6 }
  0x15   :  { %p1283_p9 = pnand %p1282_p8, %p1276_p5 }
  0x17   :  { %1286 = shalt.err (!%p1283_p9)
}
  0x18   :  { %33 = dma.hbm_to_vmem [thread:$0]  %s1501_s1, 7296, %s28_s17, [#allocation6], %s1314_s12, %s1314_s12, %s1315_s13  }
  0x19   :  { %1307 = dma.done.wait [#allocation3], 512  }
  0x1a   :  { %1308 = vsyncadd [#allocation3], 4294966784 }
  0x1b   :  { %1309 = dma.done.wait [#allocation6], 7296  }
  0x1c   :  { %1310 = vsyncadd [#allocation6], 4294960000  ;;  %v97_v0 = vld [vmem:[#allocation2] sm:$0xff]  ;;  %vm126_vm0 = vcmask 1040384   ;;  %v98_v1 = vld [vmem:[#allocation2 + $0x8] sm:$0xff]  ;;  %vm182_vm1 = vcmask 1043456  }
  0x1d   :  { %v1344_v2 = vld [vmem:[#allocation2 + $0x18] sm:$0xff]  ;;  %s1317_s0 = smov 40   ;;  %v118_v3 = vrot.slane %v97_v0, 7  ;;  %v119_v4 = vrot.slane %v98_v1, 7  ;;  %v99_v6 = vld [vmem:[#allocation2 + $0x10] sm:$0xff]  ;;  %s1318_s1 = smov 20  }
  0x1e   :  { %147 = vrot.lane.b32.xlu1 %v97_v0, %s1317_s0  ;;  %v121_v5 = vrot.slane %v1344_v2, 7  ;;  %v47_v7 = vld [vmem:[#allocation5 + $0x38] sm:$0xf]  ;;  %v46_v8 = vld [vmem:[#allocation5 + $0x30] sm:$0xff]  ;;  %v45_v10 = vld [vmem:[#allocation5 + $0x28] sm:$0xff]  ;;  %v120_v12 = vrot.slane %v99_v6, 7 }
  0x1f   :  { %v127_v9 = vsel %vm126_vm0, 0.0, %v118_v3  ;;  %1083 = vmatprep.subr.msk.mxu0 %vm182_vm1, %v47_v7  ;;  %v128_v11 = vsel %vm126_vm0, 0.0, %v119_v4  ;;  %v44_v14 = vld [vmem:[#allocation5 + $0x20] sm:$0xff]  ;;  %v43_v15 = vld [vmem:[#allocation5 + $0x18] sm:$0xff]  ;;  %v42_v17 = vld [vmem:[#allocation5 + $0x10] sm:$0xff]  ;;  %v105_v20 = vrot.slane %v97_v0, 6 }
  0x20   :  { %135 = vrot.lane.b32.xlu0 %v127_v9, %s1318_s1  ;;  %1084 = vmatpush3.msk.msra.mxu0 %vm182_vm1, %v47_v7  ;;  %v130_v13 = vsel %vm126_vm0, 0.0, %v121_v5  ;;  %v129_v16 = vsel %vm126_vm0, 0.0, %v120_v12  ;;  %v41_v18 = vld [vmem:[#allocation5 + $0x8] sm:$0xff]  ;;  %v40_v19 = vld [vmem:[#allocation5] sm:$0xff]  ;;  %vm113_vm2 = vcmask 1041408   ;;  %v106_v22 = vrot.slane %v98_v1, 6 }
  0x21   :  { %1085 = vmatprep.subr.mxu0 %v46_v8  ;;  %vm159_vm3 = vcmask 162816   ;;  %v114_v23 = vsel %vm113_vm2, 0.0, %v105_v20  ;;  %vm164_vm4 = vcmask 326656   ;;  %vm169_vm5 = vcmask 490496   ;;  %v62_v44 = vld [vmem:[#allocation5 + $0xb0] sm:$0xff]  ;;  %v61_v45 = vld [vmem:[#allocation5 + $0xa8] sm:$0xff] }
  0x22   :  { %149 = vrot.lane.b32.xlu1 %v98_v1, %s1317_s0  ;;  %1086 = vmatpush3.msra.mxu0 %v46_v8  ;;  %v115_v28 = vsel %vm113_vm2, 0.0, %v106_v22  ;;  %v108_v30 = vrot.slane %v1344_v2, 6  ;;  %v107_v33 = vrot.slane %v99_v6, 6  ;;  %v60_v46 = vld [vmem:[#allocation5 + $0xa0] sm:$0xff]  ;;  %v59_v47 = vld [vmem:[#allocation5 + $0x98] sm:$0xff]  ;;  %v58_v48 = vld [vmem:[#allocation5 + $0x90] sm:$0xff] }
  0x23   :  { %1087 = vmatprep.subr.mxu0 %v45_v10  ;;  %1105 = vmatprep.subr.mxu1 %v62_v44  ;;  %v57_v49 = vld [vmem:[#allocation5 + $0x88] sm:$0xff]  ;;  %v56_v50 = vld [vmem:[#allocation5 + $0x80] sm:$0xff]  ;;  %v55_v51 = vld [vmem:[#allocation5 + $0x78] sm:$0xff]  ;;  %vm359_vm6 = vcmask 1042432   ;;  %s1319_s21 = smov 80   ;;  %vm346_vm7 = vcmask 1045504  }
  0x24   :  { %137 = vrot.lane.b32.xlu0 %v128_v11, %s1318_s1  ;;  %1088 = vmatpush3.msra.mxu0 %v45_v10  ;;  %v117_v35 = vsel %vm113_vm2, 0.0, %v108_v30  ;;  %v116_v37 = vsel %vm113_vm2, 0.0, %v107_v33  ;;  %v54_v52 = vld [vmem:[#allocation5 + $0x70] sm:$0xff]  ;;  %v53_v53 = vld [vmem:[#allocation5 + $0x68] sm:$0xff]  ;;  %v52_v54 = vld [vmem:[#allocation5 + $0x60] sm:$0xff]  ;;  %vm396_vm8 = vcmask 654336  }
  0x25   :  { %1089 = vmatprep.subr.mxu0 %v44_v14  ;;  %1106 = vmatpush3.msra.mxu1 %v62_v44  ;;  %v51_v55 = vld [vmem:[#allocation5 + $0x58] sm:$0xff]  ;;  %v48_v44 = vld [vmem:[#allocation5 + $0x40] sm:$0xff]  ;;  %vm401_vm9 = vcmask 982016   ;;  %vm684_vm10 = vcmask 1044480   ;;  %vm671_vm11 = vcmask 39936   ;;  %vm1321_vm12 = vmmov 0  }
  0x26   :  { %141 = vrot.lane.b32.xlu1 %v130_v13, %s1318_s1  ;;  %1090 = vmatpush3.msra.mxu0 %v44_v14  ;;  %vm813_vm13 = vcmask 1041409   ;;  %vm815_vm14 = vcmask 1042434   ;;  %vm817_vm15 = vcmask 1043459   ;;  %s1322_s22 = smov [#allocation7]   ;;  %vm972_vm0 = vcmask 60416  }
  0x27   :  { %1091 = vmatprep.subr.mxu0 %v43_v15  ;;  %1107 = vmatprep.subr.mxu1 %v61_v45  ;;  %s980_s23 = sshll.u32 %s1322_s22, 4  ;;  %s981_s23 = int_to_ptr.vmem [resolvable:$true] %s980_s23 }
  0x28   :  { %139 = vrot.lane.b32.xlu0 %v129_v16, %s1318_s1  ;;  %1092 = vmatpush3.msra.mxu0 %v43_v15  ;;  %s1287_s24 = scalar_lea.vmem %s981_s23, 64  ;;  %p1292_p11 = scmp.lt.s32.totalorder %s981_s23, %s981_s23 }
  0x29   :  { %1093 = vmatprep.subr.mxu0 %v42_v17  ;;  %1108 = vmatpush3.msra.mxu1 %v61_v45  ;;  %p1288_p10 = scmp.ne.s32.totalorder %s981_s23, %s1287_s24  ;;  %p1293_p12 = scmp.lt.s32.totalorder %s1287_s24, %s1287_s24 }
  0x2a   :  { %153 = vrot.lane.b32.xlu1 %v1344_v2, %s1317_s0  ;;  %1094 = vmatpush3.msra.mxu0 %v42_v17 }
  0x2b   :  { %1095 = vmatprep.subr.mxu0 %v41_v18  ;;  %1109 = vmatprep.subr.mxu1 %v60_v46  ;;  %p1294_p13 = por %p1293_p12, %p1292_p11 }
  0x2c   :  { %151 = vrot.lane.b32.xlu0 %v99_v6, %s1317_s0  ;;  %1096 = vmatpush3.msra.mxu0 %v41_v18 }
  0x2d   :  { %1097 = vmatprep.subr.mxu0 %v40_v19  ;;  %1110 = vmatpush3.msra.mxu1 %v60_v46  ;;  %p1295_p0 = pnand %p1294_p13, %p1288_p10 }
  0x2e   :  { %1098 = vmatpush3.msra.mxu0 %v40_v19  ;;  %1111 = vmatprep.subr.mxu1 %v59_v47 }
  0x2f   :  { %1112 = vmatpush3.msra.mxu1 %v59_v47 }
  0x30   :  { %1113 = vmatprep.subr.mxu1 %v58_v48 }
  0x31   :  { %1114 = vmatpush3.msra.mxu1 %v58_v48 }
  0x32   :  { %1115 = vmatprep.subr.mxu1 %v57_v49 }
  0x33   :  { %1116 = vmatpush3.msra.mxu1 %v57_v49 }
  0x34   :  { %1117 = vmatprep.subr.mxu1 %v56_v50 }
  0x35   :  { %1118 = vmatpush3.msra.mxu1 %v56_v50 }
  0x36   :  { %1119 = vmatprep.subr.mxu1 %v55_v51 }
  0x37   :  { %1120 = vmatpush3.msra.mxu1 %v55_v51 }
  0x38   :  { %1121 = vmatprep.subr.mxu1 %v54_v52 }
  0x39   :  { %1122 = vmatpush3.msra.mxu1 %v54_v52 }
  0x3a   :  { %1123 = vmatprep.subr.mxu1 %v53_v53 }
  0x3b   :  { %1124 = vmatpush3.msra.mxu1 %v53_v53 }
  0x3c   :  { %1125 = vmatprep.subr.mxu1 %v52_v54 }
  0x3d   :  { %1126 = vmatpush3.msra.mxu1 %v52_v54 }
  0x3e   :  { %1127 = vmatprep.subr.mxu1 %v51_v55 }
  0x3f   :  { %1128 = vmatpush3.msra.mxu1 %v51_v55 }
  0x90   :  { %v148_v21 = vpop.permute.xlu1 %147 }
  0x92   :  { %v136_v24 = vpop.permute.xlu0 %135 }
  0x93   :  { %v160_v25 = vsel %vm159_vm3, %v114_v23, %v136_v24 }
  0x94   :  { %v150_v26 = vpop.permute.xlu1 %149  ;;  %v165_v27 = vsel %vm164_vm4, %v160_v25, %v148_v21 }
  0x95   :  { %1099 = vmatprep.mubr.msk.f32.mxu0 %vm169_vm5, %v165_v27 }
  0x96   :  { %v138_v29 = vpop.permute.xlu0 %137 }
  0x97   :  { %v161_v31 = vsel %vm159_vm3, %v115_v28, %v138_v29 }
  0x98   :  { %v142_v32 = vpop.permute.xlu1 %141  ;;  %v166_v34 = vsel %vm164_vm4, %v161_v31, %v150_v26 }
  0x99   :  { %1100 = vmatmul.mubr.msk.f32.vlgmr.msra.gmra.mxu0 %vm169_vm5, %v166_v34  ;;  %v163_v38 = vsel %vm159_vm3, %v117_v35, %v142_v32  ;;  %v314_v32 = vlaneseq  ;;  %v1393_v34 = vld [vmem:[#allocation5 + $0xb8] sm:$0xff] }
  0x9a   :  { %v140_v36 = vpop.permute.xlu0 %139 }
  0x9b   :  { %v162_v40 = vsel %vm159_vm3, %v116_v37, %v140_v36  ;;  %v1391_v33 = vshrl.u32 %v314_v32, 7  ;;  %v70_v32 = vld [vmem:[#allocation5 + $0xf0] sm:$0xff] }
  0x9c   :  { %v154_v39 = vpop.permute.xlu1 %153 }
  0x9d   :  { %v168_v43 = vsel %vm164_vm4, %v163_v38, %v154_v39  ;;  %v316_v36 = vsub.s32 0, %v1391_v33  ;;  %v50_v38 = vld [vmem:[#allocation5 + $0x50] sm:$0xff]  ;;  %v49_v39 = vld [vmem:[#allocation5 + $0x48] sm:$0xff] }
  0x9e   :  { %v152_v41 = vpop.permute.xlu0 %151  ;;  %1129 = vmatprep.subr.mxu1 %v50_v38 }
  0x9f   :  { %v167_v42 = vsel %vm164_vm4, %v162_v40, %v152_v41  ;;  %1130 = vmatpush3.msra.mxu1 %v50_v38  ;;  %v66_v38 = vld [vmem:[#allocation5 + $0xd0] sm:$0xff] }
  0xa0   :  { %1102 = vmatprep.mubr.msk.f32.mxu0 %vm169_vm5, %v167_v42  ;;  %1131 = vmatprep.subr.mxu1 %v49_v39 }
  0xa1   :  { %1103 = vmatmul.mubr.msk.f32.gmra.mxu0 %vm169_vm5, %v168_v43  ;;  %v324_v43 = vsub.s32 1, %v1391_v33  ;;  %1132 = vmatpush3.msra.mxu1 %v49_v39 }
  0xa2   :  { %1133 = vmatprep.subr.mxu1 %v48_v44 }
  0xa3   :  { %1134 = vmatpush3.msra.mxu1 %v48_v44 }
 0x159   :  { %v1373_v56 = vpop.f32.mrf.mxu0 }
 0x15a   :  { %v286_v59 = vmul.f32 %v1373_v56, %v1373_v56  ;;  %v272_v62 = vsel %vm164_vm4, %v1373_v56, 0.0 }
 0x15b   :  { %v1375_v57 = vpop.f32.mrf.mxu0 }
 0x15c   :  { %v285_v58 = vmul.f32 %v1375_v57, %v1375_v57  ;;  %v271_v60 = vsel %vm164_vm4, %v1375_v57, 0.0  ;;  %v290_v2 = vsel %vm164_vm4, %v286_v59, 0.0 }
 0x15d   :  { %v273_v0 = vadd.f32 %v272_v62, %v271_v60 }
 0x15e   :  { %v289_v63 = vsel %vm164_vm4, %v285_v58, 0.0 }
 0x15f   :  { %v291_v6 = vadd.f32 %v290_v2, %v289_v63 }
 0x161   :  { %v1104_v61 = vpop.f32.mrf.mxu0 }
 0x162   :  { %v288_v3 = vmul.f32 %v1104_v61, %v1104_v61  ;;  %v276_v8 = vsel %vm164_vm4, %v1104_v61, 0.0 }
 0x163   :  { %v262_v1 = vpop.f32.mrf.mxu0 }
 0x164   :  { %v274_v4 = vsel %vm164_vm4, %v262_v1, 0.0  ;;  %v287_v5 = vmul.f32 %v262_v1, %v262_v1  ;;  %v294_v12 = vsel %vm164_vm4, %v288_v3, 0.0 }
 0x165   :  { %v275_v7 = vadd.f32 %v274_v4, %v273_v0 }
 0x166   :  { %v292_v9 = vsel %vm164_vm4, %v287_v5, 0.0 }
 0x167   :  { %v277_v10 = vadd.f32 %v276_v8, %v275_v7  ;;  %v293_v11 = vadd.f32 %v292_v9, %v291_v6 }
 0x169   :  { %v278_v13 = vrot.slane %v277_v10, 4  ;;  %v295_v14 = vadd.f32 %v294_v12, %v293_v11 }
 0x16b   :  { %v279_v15 = vadd.f32 %v278_v13, %v277_v10  ;;  %v296_v16 = vrot.slane %v295_v14, 4 }
 0x16d   :  { %v280_v17 = vrot.slane %v279_v15, 2  ;;  %v297_v18 = vadd.f32 %v296_v16, %v295_v14 }
 0x16f   :  { %v281_v19 = vadd.f32 %v280_v17, %v279_v15  ;;  %v298_v20 = vrot.slane %v297_v18, 2 }
 0x171   :  { %v282_v21 = vrot.slane %v281_v19, 1  ;;  %v299_v22 = vadd.f32 %v298_v20, %v297_v18 }
 0x173   :  { %v283_v23 = vadd.f32 %v282_v21, %v281_v19  ;;  %v300_v24 = vrot.slane %v299_v22, 1 }
 0x175   :  { %v284_v25 = vmul.f32 0.03125, %v283_v23  ;;  %v301_v26 = vadd.f32 %v300_v24, %v299_v22 }
 0x177   :  { %v302_v27 = vmul.f32 0.03125, %v301_v26  ;;  %v303_v28 = vmul.f32 %v284_v25, %v284_v25 }
 0x179   :  { %v304_v29 = vsub.f32 %v302_v27, %v303_v28  ;;  %v75_v27 = vld [vmem:[#allocation5 + $0x118] sm:$0xff]  ;;  %v74_v28 = vld [vmem:[#allocation5 + $0x110] sm:$0xff] }
 0x17a   :  { %1141 = vmatprep.subr.mxu0 %v75_v27 }
 0x17b   :  { %v305_v30 = vmax.f32 %v304_v29, 0.0  ;;  %1142 = vmatpush3.msra.mxu0 %v75_v27  ;;  %v73_v29 = vld [vmem:[#allocation5 + $0x108] sm:$0xff] }
 0x17c   :  { %1143 = vmatprep.subr.mxu0 %v74_v28 }
 0x17d   :  { %v306_v31 = vadd.f32 1e-05, %v305_v30  ;;  %1144 = vmatpush3.msra.mxu0 %v74_v28  ;;  %v72_v30 = vld [vmem:[#allocation5 + $0x100] sm:$0xff] }
 0x17e   :  { %1145 = vmatprep.subr.mxu0 %v73_v29 }
 0x17f   :  { %1231 = vrsqrt.f32 %v306_v31  ;;  %1146 = vmatpush3.msra.mxu0 %v73_v29  ;;  %v71_v31 = vld [vmem:[#allocation5 + $0xf8] sm:$0xff] }
 0x180   :  { %1147 = vmatprep.subr.mxu0 %v72_v30 }
 0x181   :  { %1148 = vmatpush3.msra.mxu0 %v72_v30 }
 0x182   :  { %1149 = vmatprep.subr.mxu0 %v71_v31 }
 0x183   :  { %1150 = vmatpush3.msra.mxu0 %v71_v31  ;;  %v64_v31 = vld [vmem:[#allocation5 + $0xc0] sm:$0xff] }
 0x184   :  { %1151 = vmatprep.subr.mxu0 %v70_v32 }
 0x185   :  { %1152 = vmatpush3.msra.mxu0 %v70_v32 }
 0x18c   :  { %v1232_v35 = vpop.eup %1231 }
 0x18d   :  { %v308_v37 = vmul.f32 %v1232_v35, %v1393_v34  ;;  %v69_v35 = vld [vmem:[#allocation5 + $0xe8] sm:$0xff] }
 0x18e   :  { %1153 = vmatprep.subr.mxu0 %v69_v35 }
 0x18f   :  { %v309_v40 = vmul.f32 %v308_v37, %v284_v25  ;;  %v317_v41 = vrot.slane %v308_v37, %v316_v36  ;;  %1154 = vmatpush3.msra.mxu0 %v69_v35  ;;  %v68_v36 = vld [vmem:[#allocation5 + $0xe0] sm:$0xff]  ;;  %v67_v37 = vld [vmem:[#allocation5 + $0xd8] sm:$0xff] }
 0x190   :  { %1155 = vmatprep.subr.mxu0 %v68_v36 }
 0x191   :  { %v311_v42 = vrot.slane %v309_v40, 7  ;;  %v320_v46 = vmul.f32 %v317_v41, %v262_v1  ;;  %v319_v48 = vmul.f32 %v1373_v56, %v317_v41  ;;  %v318_v49 = vmul.f32 %v317_v41, %v1375_v57  ;;  %1156 = vmatpush3.msra.mxu0 %v68_v36 }
 0x192   :  { %v321_v50 = vmul.f32 %v1104_v61, %v317_v41  ;;  %1157 = vmatprep.subr.mxu0 %v67_v37 }
 0x193   :  { %v313_v45 = vsub.f32 %v1393_v34, %v311_v42  ;;  %1158 = vmatpush3.msra.mxu0 %v67_v37 }
 0x194   :  { %1159 = vmatprep.subr.mxu0 %v66_v38 }
 0x195   :  { %v325_v47 = vrot.slane %v313_v45, %v324_v43  ;;  %1160 = vmatpush3.msra.mxu0 %v66_v38 }
 0x197   :  { %v328_v51 = vadd.f32 %v325_v47, %v320_v46  ;;  %v327_v52 = vadd.f32 %v325_v47, %v319_v48  ;;  %v326_v53 = vadd.f32 %v325_v47, %v318_v49  ;;  %v329_v54 = vadd.f32 %v325_v47, %v321_v50 }
 0x199   :  { %v331_v55 = vmax.f32 %v327_v52, 0.0  ;;  %v330_v58 = vmax.f32 %v326_v53, 0.0  ;;  %v332_v59 = vmax.f32 %v328_v51, 0.0  ;;  %v333_v60 = vmax.f32 %v329_v54, 0.0 }
 0x19b   :  { %382 = vrot.lane.b32.xlu1 %v331_v55, %s1319_s21  ;;  %380 = vrot.lane.b32.xlu0 %v330_v58, %s1319_s21  ;;  %v352_v62 = vrot.slane %v331_v55, 5  ;;  %v351_v63 = vrot.slane %v330_v58, 5  ;;  %v354_v56 = vrot.slane %v333_v60, 5  ;;  %v353_v2 = vrot.slane %v332_v59, 5 }
 0x19c   :  { %v339_v5 = vrot.slane %v331_v55, 2  ;;  %v338_v6 = vrot.slane %v330_v58, 2  ;;  %v341_v15 = vrot.slane %v333_v60, 2  ;;  %v340_v16 = vrot.slane %v332_v59, 2 }
 0x19d   :  { %v361_v0 = vsel %vm359_vm6, 0.0, %v352_v62  ;;  %v360_v1 = vsel %vm359_vm6, 0.0, %v351_v63  ;;  %v363_v57 = vsel %vm359_vm6, 0.0, %v354_v56  ;;  %v362_v61 = vsel %vm359_vm6, 0.0, %v353_v2 }
 0x19e   :  { %v348_v8 = vsel %vm346_vm7, 0.0, %v339_v5  ;;  %v347_v10 = vsel %vm346_vm7, 0.0, %v338_v6  ;;  %v350_v19 = vsel %vm346_vm7, 0.0, %v341_v15  ;;  %v349_v20 = vsel %vm346_vm7, 0.0, %v340_v16 }
 0x19f   :  { %370 = vrot.lane.b32.xlu1 %v361_v0, %s1317_s0  ;;  %368 = vrot.lane.b32.xlu0 %v360_v1, %s1317_s0 }
 0x1a3   :  { %374 = vrot.lane.b32.xlu1 %v363_v57, %s1317_s0  ;;  %372 = vrot.lane.b32.xlu0 %v362_v61, %s1317_s0 }
 0x1a7   :  { %386 = vrot.lane.b32.xlu1 %v333_v60, %s1319_s21  ;;  %384 = vrot.lane.b32.xlu0 %v332_v59, %s1319_s21 }
 0x20d   :  { %v383_v3 = vpop.permute.xlu1 %382  ;;  %v381_v4 = vpop.permute.xlu0 %380 }
 0x211   :  { %v371_v7 = vpop.permute.xlu1 %370  ;;  %v369_v9 = vpop.permute.xlu0 %368 }
 0x212   :  { %v393_v11 = vsel %vm164_vm4, %v348_v8, %v371_v7  ;;  %v392_v12 = vsel %vm164_vm4, %v347_v10, %v369_v9 }
 0x213   :  { %v397_v13 = vsel %vm396_vm8, %v392_v12, %v381_v4  ;;  %v398_v14 = vsel %vm396_vm8, %v393_v11, %v383_v3 }
 0x214   :  { %1135 = vmatprep.mubr.msk.f32.mxu1 %vm401_vm9, %v397_v13 }
 0x215   :  { %v375_v17 = vpop.permute.xlu1 %374  ;;  %v373_v18 = vpop.permute.xlu0 %372  ;;  %1136 = vmatmul.mubr.msk.f32.vlgmr.msra.gmra.mxu1 %vm401_vm9, %v398_v14 }
 0x216   :  { %v395_v21 = vsel %vm164_vm4, %v350_v19, %v375_v17  ;;  %v394_v22 = vsel %vm164_vm4, %v349_v20, %v373_v18  ;;  %v544_v17 = vsub.s32 2, %v1391_v33 }
 0x219   :  { %v387_v23 = vpop.permute.xlu1 %386  ;;  %v385_v24 = vpop.permute.xlu0 %384 }
 0x21a   :  { %v400_v25 = vsel %vm396_vm8, %v395_v21, %v387_v23  ;;  %v399_v26 = vsel %vm396_vm8, %v394_v22, %v385_v24  ;;  %v552_v21 = vsub.s32 3, %v1391_v33 }
 0x21b   :  { %1138 = vmatprep.mubr.msk.f32.mxu1 %vm401_vm9, %v399_v26 }
 0x21c   :  { %1139 = vmatmul.mubr.msk.f32.gmra.mxu1 %vm401_vm9, %v400_v25 }
 0x2d5   :  { %v1137_v39 = vpop.f32.mrf.mxu1 }
 0x2d6   :  { %v514_v42 = vmul.f32 %v1137_v39, %v1137_v39  ;;  %v500_v45 = vsel %vm396_vm8, %v1137_v39, 0.0 }
 0x2d7   :  { %v480_v40 = vpop.f32.mrf.mxu1 }
 0x2d8   :  { %v513_v41 = vmul.f32 %v480_v40, %v480_v40  ;;  %v499_v43 = vsel %vm396_vm8, %v480_v40, 0.0  ;;  %v518_v49 = vsel %vm396_vm8, %v514_v42, 0.0 }
 0x2d9   :  { %v501_v47 = vadd.f32 %v500_v45, %v499_v43  ;;  %v76_v43 = vld [vmem:[#allocation5 + $0x120] sm:$0x1f] }
 0x2da   :  { %v517_v46 = vsel %vm396_vm8, %v513_v41, 0.0  ;;  %1167 = vmatprep.subr.msk.mxu1 %vm684_vm10, %v76_v43 }
 0x2db   :  { %v519_v53 = vadd.f32 %v518_v49, %v517_v46  ;;  %1168 = vmatpush3.msk.msra.mxu1 %vm684_vm10, %v76_v43 }
 0x2dc   :  { %v1140_v44 = vpop.f32.mrf.mxu1 }
 0x2dd   :  { %v516_v50 = vmul.f32 %v1140_v44, %v1140_v44  ;;  %v504_v55 = vsel %vm396_vm8, %v1140_v44, 0.0 }
 0x2de   :  { %v490_v48 = vpop.f32.mrf.mxu1 }
 0x2df   :  { %v502_v51 = vsel %vm396_vm8, %v490_v48, 0.0  ;;  %v515_v52 = vmul.f32 %v490_v48, %v490_v48  ;;  %v522_v62 = vsel %vm396_vm8, %v516_v50, 0.0 }
 0x2e0   :  { %v503_v54 = vadd.f32 %v502_v51, %v501_v47 }
 0x2e1   :  { %v520_v58 = vsel %vm396_vm8, %v515_v52, 0.0 }
 0x2e2   :  { %v505_v59 = vadd.f32 %v504_v55, %v503_v54  ;;  %v521_v60 = vadd.f32 %v520_v58, %v519_v53 }
 0x2e4   :  { %v506_v63 = vrot.slane %v505_v59, 4  ;;  %v523_v0 = vadd.f32 %v522_v62, %v521_v60  ;;  %v86_v60 = vld [vmem:[#allocation5 + $0x170] sm:$0xff]  ;;  %v96_v62 = vld [vmem:[#allocation5 + $0x1c0] sm:$0xff] }
 0x2e6   :  { %v507_v1 = vadd.f32 %v506_v63, %v505_v59  ;;  %v524_v56 = vrot.slane %v523_v0, 4  ;;  %v1320_v59 = vmov 0.0   ;;  %v85_v63 = vld [vmem:[#allocation5 + $0x168] sm:$0xff] }
 0x2e7   :  { %1175 = vmatprep.subr.mxu0 %v1320_v59  ;;  %1198 = vmatprep.subr.mxu1 %v1320_v59 }
 0x2e8   :  { %v508_v2 = vrot.slane %v507_v1, 2  ;;  %v525_v57 = vadd.f32 %v524_v56, %v523_v0  ;;  %v95_v0 = vld [vmem:[#allocation5 + $0x1b8] sm:$0xff]  ;;  %v94_v56 = vld [vmem:[#allocation5 + $0x1b0] sm:$0xff] }
 0x2ea   :  { %v509_v61 = vadd.f32 %v508_v2, %v507_v1  ;;  %v526_v3 = vrot.slane %v525_v57, 2  ;;  %v84_v1 = vld [vmem:[#allocation5 + $0x160] sm:$0xff]  ;;  %v83_v2 = vld [vmem:[#allocation5 + $0x158] sm:$0xff] }
 0x2ec   :  { %v510_v4 = vrot.slane %v509_v61, 1  ;;  %v527_v5 = vadd.f32 %v526_v3, %v525_v57  ;;  %v93_v57 = vld [vmem:[#allocation5 + $0x1a8] sm:$0xff]  ;;  %v92_v3 = vld [vmem:[#allocation5 + $0x1a0] sm:$0xff] }
 0x2ee   :  { %v511_v6 = vadd.f32 %v510_v4, %v509_v61  ;;  %v528_v7 = vrot.slane %v527_v5, 1  ;;  %v82_v61 = vld [vmem:[#allocation5 + $0x150] sm:$0xff]  ;;  %v81_v4 = vld [vmem:[#allocation5 + $0x148] sm:$0xff] }
 0x2f0   :  { %v512_v8 = vmul.f32 0.03125, %v511_v6  ;;  %v529_v9 = vadd.f32 %v528_v7, %v527_v5  ;;  %v91_v5 = vld [vmem:[#allocation5 + $0x198] sm:$0xff]  ;;  %v80_v6 = vld [vmem:[#allocation5 + $0x140] sm:$0xff]  ;;  %v90_v7 = vld [vmem:[#allocation5 + $0x190] sm:$0xff] }
 0x2f2   :  { %v530_v10 = vmul.f32 0.03125, %v529_v9  ;;  %v531_v11 = vmul.f32 %v512_v8, %v512_v8  ;;  %v89_v9 = vld [vmem:[#allocation5 + $0x188] sm:$0xff] }
 0x2f4   :  { %v532_v12 = vsub.f32 %v530_v10, %v531_v11  ;;  %v78_v10 = vld [vmem:[#allocation5 + $0x130] sm:$0xff]  ;;  %v88_v11 = vld [vmem:[#allocation5 + $0x180] sm:$0xff] }
 0x2f6   :  { %v533_v13 = vmax.f32 %v532_v12, 0.0  ;;  %v77_v12 = vld [vmem:[#allocation5 + $0x128] sm:$0xff] }
 0x2f8   :  { %v534_v14 = vadd.f32 1e-05, %v533_v13  ;;  %v87_v13 = vld [vmem:[#allocation5 + $0x178] sm:$0xff] }
 0x2fa   :  { %1233 = vrsqrt.f32 %v534_v14 }
 0x307   :  { %v1234_v15 = vpop.eup %1233 }
 0x308   :  { %v536_v16 = vmul.f32 %v1234_v15, %v1393_v34 }
 0x30a   :  { %v537_v18 = vmul.f32 %v536_v16, %v512_v8  ;;  %v545_v20 = vrot.slane %v536_v16, %v544_v17  ;;  %v79_v8 = vld [vmem:[#allocation5 + $0x138] sm:$0xff] }
 0x30c   :  { %v539_v19 = vrot.slane %v537_v18, 7  ;;  %v547_v23 = vmul.f32 %v1137_v39, %v545_v20  ;;  %v548_v24 = vmul.f32 %v545_v20, %v490_v48  ;;  %v546_v26 = vmul.f32 %v545_v20, %v480_v40 }
 0x30d   :  { %v549_v27 = vmul.f32 %v1140_v44, %v545_v20  ;;  %v65_v44 = vld [vmem:[#allocation5 + $0xc8] sm:$0xff] }
 0x30e   :  { %v541_v22 = vsub.f32 %v1393_v34, %v539_v19 }
 0x310   :  { %v553_v25 = vrot.slane %v541_v22, %v552_v21 }
 0x312   :  { %v1433_v28 = vadd.f32 %v553_v25, %v548_v24  ;;  %v1435_v29 = vadd.f32 %v553_v25, %v546_v26  ;;  %v1437_v30 = vadd.f32 %v553_v25, %v547_v23  ;;  %v1439_v32 = vadd.f32 %v553_v25, %v549_v27 }
 0x314   :  { %v560_v35 = vmax.f32 %v1433_v28, 0.0  ;;  %v558_v36 = vmax.f32 %v1435_v29, 0.0  ;;  %v559_v37 = vmax.f32 %v1437_v30, 0.0  ;;  %v561_v40 = vmax.f32 %v1439_v32, 0.0 }
 0x316   :  { %v562_v38 = vmul.f32 %v558_v36, %v64_v31  ;;  %v563_v39 = vmul.f32 %v559_v37, %v64_v31  ;;  %v564_v41 = vmul.f32 %v560_v35, %v64_v31  ;;  %v565_v42 = vmul.f32 %v561_v40, %v64_v31 }
 0x318   :  { %1161 = vmatprep.mubr.msk.f32.mxu0 %vm396_vm8, %v562_v38 }
 0x319   :  { %1162 = vmatmul.mubr.msk.f32.vlgmr.msra.gmra.mxu0 %vm396_vm8, %v563_v39 }
 0x31a   :  { %1164 = vmatprep.mubr.msk.f32.mxu0 %vm396_vm8, %v564_v41  ;;  %1176 = vmatpush3.msra.mxu0 %v86_v60 }
 0x31b   :  { %1177 = vmatprep.subr.mxu0 %v1320_v59 }
 0x31c   :  { %1178 = vmatpush3.msra.mxu0 %v85_v63 }
 0x31d   :  { %1165 = vmatmul.mubr.msk.f32.gmra.mxu0 %vm396_vm8, %v565_v42  ;;  %1179 = vmatprep.subr.mxu0 %v1320_v59 }
 0x31e   :  { %1180 = vmatpush3.msra.mxu0 %v84_v1  ;;  %1195 = vmatprep.mubr.msk.f32.mxu0 %vm1321_vm12, %v1320_v59 }
 0x31f   :  { %1181 = vmatprep.subr.mxu0 %v1320_v59 }
 0x320   :  { %1182 = vmatpush3.msra.mxu0 %v83_v2 }
 0x321   :  { %1183 = vmatprep.subr.mxu0 %v1320_v59 }
 0x322   :  { %1184 = vmatpush3.msra.mxu0 %v82_v61 }
 0x323   :  { %1185 = vmatprep.subr.mxu0 %v1320_v59 }
 0x324   :  { %1186 = vmatpush3.msra.mxu0 %v81_v4 }
 0x325   :  { %1187 = vmatprep.subr.mxu0 %v1320_v59 }
 0x326   :  { %1188 = vmatpush3.msra.mxu0 %v80_v6 }
 0x327   :  { %1189 = vmatprep.subr.mxu0 %v1320_v59 }
 0x328   :  { %1190 = vmatpush3.msra.mxu0 %v79_v8 }
 0x329   :  { %1191 = vmatprep.subr.mxu0 %v1320_v59 }
 0x32a   :  { %1192 = vmatpush3.msra.mxu0 %v78_v10 }
 0x32b   :  { %1193 = vmatprep.subr.mxu0 %v1320_v59 }
 0x32c   :  { %1194 = vmatpush3.msra.mxu0 %v77_v12 }
 0x3d9   :  { %v1163_v45 = vpop.f32.mrf.mxu0 }
 0x3da   :  { %v664_v46 = vadd.f32 %v1163_v45, %v65_v44 }
 0x3db   :  { %v644_v47 = vpop.f32.mrf.mxu0 }
 0x3dc   :  { %v663_v48 = vadd.f32 %v644_v47, %v65_v44 }
 0x3dd   :  { %v1166_v49 = vpop.f32.mrf.mxu0 }
 0x3de   :  { %1235 = vtanh.f32 %v663_v48  ;;  %v666_v50 = vadd.f32 %v1166_v49, %v65_v44 }
 0x3df   :  { %1237 = vtanh.f32 %v664_v46  ;;  %v654_v51 = vpop.f32.mrf.mxu0 }
 0x3e0   :  { %v665_v52 = vadd.f32 %v654_v51, %v65_v44 }
 0x3e2   :  { %1239 = vtanh.f32 %v665_v52 }
 0x3e3   :  { %1241 = vtanh.f32 %v666_v50 }
 0x3eb   :  { %v1236_v53 = vpop.eup %1235 }
 0x3ec   :  { %v1238_v54 = vpop.eup %1237  ;;  %1169 = vmatprep.mubr.msk.f32.mxu1 %vm671_vm11, %v1236_v53 }
 0x3ed   :  { %1170 = vmatmul.mubr.msk.f32.vlgmr.msra.gmra.mxu1 %vm671_vm11, %v1238_v54 }
 0x3ee   :  { %1199 = vmatpush3.msra.mxu1 %v96_v62 }
 0x3ef   :  { %v1240_v55 = vpop.eup %1239  ;;  %1200 = vmatprep.subr.mxu1 %v1320_v59 }
 0x3f0   :  { %v1242_v58 = vpop.eup %1241  ;;  %1172 = vmatprep.mubr.msk.f32.mxu1 %vm671_vm11, %v1240_v55  ;;  %1201 = vmatpush3.msra.mxu1 %v95_v0  ;;  %v893_v55 = vsub.s32 5, %v1391_v33 }
 0x3f1   :  { %1173 = vmatmul.mubr.msk.f32.gmra.mxu1 %vm671_vm11, %v1242_v58  ;;  %1202 = vmatprep.subr.mxu1 %v1320_v59 }
 0x3f2   :  { %1203 = vmatpush3.msra.mxu1 %v94_v56  ;;  %1218 = vmatprep.mubr.msk.f32.mxu1 %vm1321_vm12, %v1320_v59  ;;  %v894_v58 = vrot.slane %v1393_v34, %v893_v55 }
 0x3f3   :  { %1204 = vmatprep.subr.mxu1 %v1320_v59 }
 0x3f4   :  { %1205 = vmatpush3.msra.mxu1 %v93_v57  ;;  %v807_v57 = vsub.s32 4, %v1391_v33 }
 0x3f5   :  { %1206 = vmatprep.subr.mxu1 %v1320_v59 }
 0x3f6   :  { %1207 = vmatpush3.msra.mxu1 %v92_v3  ;;  %v808_v61 = vrot.slane %v1393_v34, %v807_v57 }
 0x3f7   :  { %1208 = vmatprep.subr.mxu1 %v1320_v59 }
 0x3f8   :  { %1209 = vmatpush3.msra.mxu1 %v91_v5 }
 0x3f9   :  { %1210 = vmatprep.subr.mxu1 %v1320_v59 }
 0x3fa   :  { %1211 = vmatpush3.msra.mxu1 %v90_v7 }
 0x3fb   :  { %1212 = vmatprep.subr.mxu1 %v1320_v59 }
 0x3fc   :  { %1213 = vmatpush3.msra.mxu1 %v89_v9 }
 0x3fd   :  { %1214 = vmatprep.subr.mxu1 %v1320_v59 }
 0x3fe   :  { %1215 = vmatpush3.msra.mxu1 %v88_v11 }
 0x3ff   :  { %1216 = vmatprep.subr.mxu1 %v1320_v59 }
 0x400   :  { %1217 = vmatpush3.msra.mxu1 %v87_v13 }
 0x4ad   :  { %v1171_v14 = vpop.f32.mrf.mxu1 }
 0x4ae   :  { %v774_v15 = vmul.f32 %v1171_v14, %v559_v37 }
 0x4af   :  { %v754_v16 = vpop.f32.mrf.mxu1 }
 0x4b0   :  { %v784_v17 = vsel %vm396_vm8, %v774_v15, 0.0  ;;  %v773_v18 = vmul.f32 %v754_v16, %v558_v36 }
 0x4b1   :  { %v785_v19 = vrot.slane %v784_v17, 4  ;;  %v1174_v20 = vpop.f32.mrf.mxu1 }
 0x4b2   :  { %v777_v21 = vsel %vm396_vm8, %v773_v18, 0.0  ;;  %v776_v22 = vmul.f32 %v1174_v20, %v561_v40 }
 0x4b3   :  { %v786_v23 = vadd.f32 %v785_v19, %v784_v17  ;;  %v778_v24 = vrot.slane %v777_v21, 4  ;;  %v764_v25 = vpop.f32.mrf.mxu1 }
 0x4b4   :  { %v798_v26 = vsel %vm396_vm8, %v776_v22, 0.0  ;;  %v775_v27 = vmul.f32 %v764_v25, %v560_v35 }
 0x4b5   :  { %v787_v30 = vrot.slane %v786_v23, 2  ;;  %v779_v31 = vadd.f32 %v778_v24, %v777_v21  ;;  %v799_v37 = vrot.slane %v798_v26, 4 }
 0x4b6   :  { %v791_v29 = vsel %vm396_vm8, %v775_v27, 0.0 }
 0x4b7   :  { %v780_v36 = vrot.slane %v779_v31, 2  ;;  %v800_v38 = vadd.f32 %v799_v37, %v798_v26  ;;  %v792_v39 = vrot.slane %v791_v29, 4  ;;  %v788_v41 = vadd.f32 %v787_v30, %v786_v23 }
 0x4b9   :  { %v781_v42 = vadd.f32 %v780_v36, %v779_v31  ;;  %v801_v32 = vrot.slane %v800_v38, 2  ;;  %v793_v40 = vadd.f32 %v792_v39, %v791_v29  ;;  %v789_v46 = vrot.slane %v788_v41, 1 }
 0x4bb   :  { %v782_v43 = vrot.slane %v781_v42, 1  ;;  %v802_v44 = vadd.f32 %v801_v32, %v800_v38  ;;  %v794_v45 = vrot.slane %v793_v40, 2  ;;  %v790_v49 = vadd.f32 %v789_v46, %v788_v41 }
 0x4bd   :  { %v795_v47 = vadd.f32 %v794_v45, %v793_v40  ;;  %v783_v48 = vadd.f32 %v782_v43, %v781_v42  ;;  %v803_v28 = vrot.slane %v802_v44, 1 }
 0x4bf   :  { %v796_v35 = vrot.slane %v795_v47, 1  ;;  %v814_v51 = vsel %vm813_vm13, %v790_v49, %v783_v48  ;;  %v804_v52 = vadd.f32 %v803_v28, %v802_v44 }
 0x4c1   :  { %v797_v50 = vadd.f32 %v796_v35, %v795_v47 }
 0x4c3   :  { %v816_v53 = vsel %vm815_vm14, %v797_v50, %v814_v51 }
 0x4c4   :  { %v818_v54 = vsel %vm817_vm15, %v804_v52, %v816_v53 }
 0x4c5   :  { %1196 = vmatmul.mubr.msk.f32.vlgmr.msra.gmra.mxu0 %vm396_vm8, %v818_v54  ;;  %1219 = vmatmul.mubr.msk.f32.vlgmr.msra.gmra.mxu1 %vm396_vm8, %v818_v54 }
 0x585   :  { %v887_v59 = vpop.f32.mrf.mxu0  ;;  %v961_v60 = vpop.f32.mrf.mxu1 }
 0x586   :  { %v962_v62 = vadd.f32 %v961_v60, %v894_v58  ;;  %v888_v3 = vadd.f32 %v887_v59, %v808_v61 }
 0x587   :  { %v1197_v63 = vpop.f32.mrf.mxu0  ;;  %v1220_v0 = vpop.f32.mrf.mxu1 }
 0x588   :  { %v1010_v1 = vmul.f32 -1.442695, %v962_v62 }
 0x58a   :  { %1243 = vpow2.f32 %v1010_v1 }
 0x597   :  { %v1244_v56 = vpop.eup %1243 }
 0x598   :  { %v968_v2 = vadd.f32 1.0, %v1244_v56 }
 0x59a   :  { %1245 = vrcp.f32 %v968_v2 }
 0x5a7   :  { %v1246_v4 = vpop.eup %1245 }
 0x5a8   :  { %v971_v5 = vmul.f32 %v1246_v4, %v888_v3 }
 0x5aa   :  { %973 = vst.msk [vmem:[#allocation7] sm:$0xf] %vm972_vm0, %v971_v5 }
 0x5ab   :  { %1298 = shalt.err (!%p1295_p0)
}
 0x5ac   :  { %983 = dma.vmem_to_hbm [thread:$0]  %s981_s23, 64, %s1502_s2, [#allocation4]  }
 0x5ad   :  { %1311 = dma.done.wait [#allocation4], 64  }
 0x5ae   :  { %1312 = vsyncadd [#allocation4], 4294967232 }
 0x5af   :  { %987 = vsyncpa [#allocation3], 1 }
 0x5b0   :  { %988 = vsyncpa [#allocation6], 1 }
 0x5b1   :  { %989 = vsyncpa [#allocation4], 1 }

</bundles_post_ra>
